<compile_context>
chip_gen: v7x
topology: tpu7x:2x2x1
jax: 0.10.0
libtpu: 0.0.40
codegen_flags: <defaults>
</compile_context>

<pallas_src>
import functools

import jax
import jax.numpy as jnp
from jax import lax
from jax.experimental import pallas as pl
from jax.experimental.pallas import tpu as pltpu

PHONEME_SIZE = 40
PHONEME_EMB = 16
SPEAKER_SIZE = 4
SPEAKER_EMB = 16
IN_CH = PHONEME_EMB + SPEAKER_EMB   # 32
HIDDEN = 32
LANE = 128

_PREC = jax.lax.Precision.HIGHEST   # pin MXU pass count -> exact f32 semantics


def yukarin_s_kernel(scal_ref, pid_ref, wa_ref, w2_ref, spk_ref, misc_ref, out_ref):
    Lp = out_ref.shape[1]
    sid = scal_ref[0]       # speaker id
    vlen = scal_ref[1]      # valid sequence length (runtime, <= Lp)

    # ---- masks, built once and reused by both convs --------------------------
    lane = lax.broadcasted_iota(jnp.int32, (1, Lp), 1)
    valid = (lane < vlen).astype(jnp.float32)          # 1 on real lanes
    not_first = (lane != 0).astype(jnp.float32)        # 0 only at t = 0
    not_last = (lane != vlen - 1).astype(jnp.float32)  # 0 only at t = vlen-1
    is_first = 1.0 - not_first
    is_last = 1.0 - not_last

    # ---- speaker-dependent conv1 bias + edge corrections (table lookup) ------
    sp_sel = (lax.broadcasted_iota(jnp.int32, (1, SPEAKER_SIZE), 1)
              == sid).astype(jnp.float32)                              # (1, 4)
    spk_col = jnp.sum(spk_ref[...] * sp_sel, axis=1, keepdims=True)    # (96, 1)
    bias1 = spk_col[0:HIDDEN]                # b1 + all-tap speaker term
    corr_prev = spk_col[HIDDEN:2 * HIDDEN]   # prev-tap speaker term (absent at t=0)
    corr_next = spk_col[2 * HIDDEN:3 * HIDDEN]  # next-tap term (absent at t=vlen-1)

    # ---- conv1 with the phoneme embedding folded in --------------------------
    # Padded lanes have pid == 0; the `* valid` below is what keeps them from
    # gathering phoneme-0's embedding -- do NOT remove it (right-edge zero
    # padding of the k=3 convs depends on it).
    pid = pid_ref[...]                                                 # (1, Lp)
    onehot = ((lax.broadcasted_iota(jnp.int32, (PHONEME_SIZE, Lp), 0) == pid)
              .astype(jnp.float32)) * valid                            # (40, Lp)
    oh_prev = pltpu.roll(onehot, shift=1, axis=1) * not_first          # x[t-1]
    oh_next = pltpu.roll(onehot, shift=Lp - 1, axis=1) * not_last      # x[t+1]
    oh3 = jnp.concatenate([oh_prev, onehot, oh_next], axis=0)          # (120, Lp)

    h1 = jnp.dot(wa_ref[...], oh3,
                 preferred_element_type=jnp.float32, precision=_PREC)  # (32, Lp)
    h1 = h1 + bias1 - corr_prev * is_first - corr_next * is_last
    # zero padded lanes so conv2 sees true zero right-padding
    h1 = jnp.maximum(h1, 0.0) * valid

    # ---- conv2: one (32, 96) @ (96, Lp) matmul --------------------------------
    h1_prev = pltpu.roll(h1, shift=1, axis=1) * not_first
    h1_next = pltpu.roll(h1, shift=Lp - 1, axis=1) * not_last
    hcat = jnp.concatenate([h1_prev, h1, h1_next], axis=0)             # (96, Lp)
    b2 = misc_ref[:, 0:1]                                              # (32, 1)
    h2 = jnp.dot(w2_ref[...], hcat,
                 preferred_element_type=jnp.float32, precision=_PREC) + b2
    h2 = jnp.maximum(h2, 0.0)                                          # (32, Lp)

    # ---- 1x1 head on VPU + XLU (M=1 -> skip the MXU) --------------------------
    wp_col = misc_ref[:, 1:2]                                          # (32, 1)
    bp = misc_ref[0:1, 2:3]                                            # (1, 1)
    out_ref[...] = jnp.sum(h2 * wp_col, axis=0, keepdims=True) + bp


def pack_params(p):
    """One-time host-side re-layout / folding of PyTorch-style params."""
    w1, b1 = p["w1"], p["b1"]                      # (3, 32, 32), (1, 32)
    e_ph, e_sp = p["emb_phoneme"], p["emb_speaker"]  # (40, 16), (4, 16)

    # phoneme part of conv1 folded through the embedding: A_k = (E_ph @ W1_k[:16]).T
    a_taps = [(e_ph @ w1[k, :PHONEME_EMB, :]).T for k in range(3)]       # (32, 40) each
    wa = jnp.concatenate(a_taps, axis=1)                                 # (32, 120)

    # speaker part of conv1 tabulated per speaker: S_k = (E_sp @ W1_k[16:]).T
    s_taps = [(e_sp @ w1[k, PHONEME_EMB:, :]).T for k in range(3)]       # (32, 4) each
    bias1_tab = b1.reshape(HIDDEN, 1) + s_taps[0] + s_taps[1] + s_taps[2]
    spk_tab = jnp.concatenate([bias1_tab, s_taps[0], s_taps[2]], axis=0)  # (96, 4)

    w2p = jnp.transpose(p["w2"], (2, 0, 1)).reshape(HIDDEN, 3 * HIDDEN)  # (32, 96)

    bp_col = jnp.zeros((HIDDEN, 1), jnp.float32).at[0, 0].set(p["bp"].reshape(()))
    misc = jnp.concatenate([p["b2"].reshape(HIDDEN, 1),                  # col 0: b2
                            p["wp"].reshape(HIDDEN, 1),                  # col 1: wp
                            bp_col], axis=1)                             # col 2: bp@row0
    return {"wa": wa, "w2p": w2p, "spk_tab": spk_tab, "misc": misc}


_BUCKETS = (128, 256, 512, 1024, 2048, 4096)


def _bucket(length):
    for b in _BUCKETS:
        if length <= b:
            return b
    return ((length + LANE - 1) // LANE) * LANE


@jax.jit
def _forward_padded(scalars, pid_pad, wa, w2p, spk_tab, misc):
    l_pad = pid_pad.shape[1]
    smem = pl.BlockSpec(memory_space=pltpu.MemorySpace.SMEM)
    vmem = pl.BlockSpec(memory_space=pltpu.MemorySpace.VMEM)
    return pl.pallas_call(
        yukarin_s_kernel,
        out_shape=jax.ShapeDtypeStruct((1, l_pad), jnp.float32),
        in_specs=[smem, vmem, vmem, vmem, vmem, vmem],
        out_specs=vmem,
    )(scalars, pid_pad, wa, w2p, spk_tab, misc)


def yukarin_s_forward(packed, phoneme_list, speaker_id):
    """Equivalent of WrapperYukarinS.forward: (L,) int32, (1,) int32 -> (L,) f32.

    L is bucketed to a static L_pad so varying L inside a bucket hits the same
    compiled kernel; the valid length travels as a runtime SMEM scalar."""
    L = int(phoneme_list.shape[0])
    l_pad = _bucket(L)
    pid_pad = jnp.pad(phoneme_list.astype(jnp.int32), (0, l_pad - L)).reshape(1, l_pad)
    scalars = jnp.concatenate([jnp.asarray(speaker_id, jnp.int32).reshape(1),
                               jnp.full((1,), L, jnp.int32)])
    out = _forward_padded(scalars, pid_pad, packed["wa"], packed["w2p"],
                          packed["spk_tab"], packed["misc"])
    return out[0, :L]   # strip lane padding; batch dim was already implicit (=1)


def reference_forward(params, phoneme_list, speaker_id):
    """Pure-JAX reference mirroring the PyTorch semantics (L, C layout)."""
    L = phoneme_list.shape[0]
    ph = params["emb_phoneme"][phoneme_list]
    sp = jnp.broadcast_to(params["emb_speaker"][speaker_id], (L, SPEAKER_EMB))
    x = jnp.concatenate([ph, sp], axis=1)

    def conv3(x, w, b):
        zero = jnp.zeros((1, x.shape[1]), x.dtype)
        xm = jnp.concatenate([zero, x[:-1]], axis=0)
        xp = jnp.concatenate([x[1:], zero], axis=0)
        return xm @ w[0] + x @ w[1] + xp @ w[2] + b

    h1 = jnp.maximum(conv3(x, params["w1"], params["b1"]), 0.0)
    h2 = jnp.maximum(conv3(h1, params["w2"], params["b2"]), 0.0)
    return (h2 @ params["wp"] + params["bp"])[:, 0]


def make_params(key):
    ks = jax.random.split(key, 7)
    scale = 0.1
    return {
        "emb_phoneme": scale * jax.random.normal(ks[0], (PHONEME_SIZE, PHONEME_EMB), jnp.float32),
        "emb_speaker": scale * jax.random.normal(ks[1], (SPEAKER_SIZE, SPEAKER_EMB), jnp.float32),
        "w1": scale * jax.random.normal(ks[2], (3, IN_CH, HIDDEN), jnp.float32),
        "b1": scale * jax.random.normal(ks[3], (1, HIDDEN), jnp.float32),
        "w2": scale * jax.random.normal(ks[4], (3, HIDDEN, HIDDEN), jnp.float32),
        "b2": scale * jax.random.normal(ks[5], (1, HIDDEN), jnp.float32),
        "wp": scale * jax.random.normal(ks[6], (HIDDEN, 1), jnp.float32),
        "bp": jnp.zeros((1, 1), jnp.float32),
    }


if __name__ == "__main__":
    key = jax.random.PRNGKey(0)
    kp, ki = jax.random.split(key)
    params = make_params(kp)
    packed = pack_params(params)

    L = 8  # sequence length (number of phonemes)
    phoneme_list = jax.random.randint(ki, (L,), 0, PHONEME_SIZE, dtype=jnp.int32)
    speaker_id = jnp.array([1], dtype=jnp.int32)

    out = yukarin_s_forward(packed, phoneme_list, speaker_id)
    out = jax.block_until_ready(out)

    ref = reference_forward(params, phoneme_list, speaker_id)
    assert out.shape == (L,)
    assert jnp.allclose(out, ref, atol=1e-5, rtol=1e-5), (out, ref)

    # second call with a different L in the same bucket must not recompile and
    # must still be correct (exercises the runtime valid-length scalar).
    L2 = 13
    ph2 = jax.random.randint(jax.random.PRNGKey(3), (L2,), 0, PHONEME_SIZE, dtype=jnp.int32)
    out2 = jax.block_until_ready(yukarin_s_forward(packed, ph2, speaker_id))
    ref2 = reference_forward(params, ph2, speaker_id)
    assert jnp.allclose(out2, ref2, atol=1e-5, rtol=1e-5), (out2, ref2)

    print("KERNEL_OK")
</pallas_src>

<mosaic_0001>
module attributes {stable_mosaic.version = 11 : i64} {
  func.func @yukarin_s_kernel(%arg0: memref<2xi32, #tpu.memory_space<smem>>, %arg1: memref<1x128xi32, #tpu.memory_space<vmem>>, %arg2: memref<32x120xf32, #tpu.memory_space<vmem>>, %arg3: memref<32x96xf32, #tpu.memory_space<vmem>>, %arg4: memref<96x4xf32, #tpu.memory_space<vmem>>, %arg5: memref<32x3xf32, #tpu.memory_space<vmem>>, %arg6: memref<1x128xf32, #tpu.memory_space<vmem>>) attributes {dimension_semantics = [], scalar_prefetch = 0 : i64, scratch_operands = 0 : i64, tpu.core_type = #tpu.core_type<tc>} {
    %c0 = arith.constant 0 : index
    %0 = memref.load %arg0[%c0] : memref<2xi32, #tpu.memory_space<smem>>
    %c1 = arith.constant 1 : index
    %1 = memref.load %arg0[%c1] : memref<2xi32, #tpu.memory_space<smem>>
    %2 = tpu.iota {dimensions = array<i32: 1>} : vector<1x128xi32>
    %3 = vector.broadcast %1 : i32 to vector<1x128xi32>
    %4 = arith.cmpi slt, %2, %3 : vector<1x128xi32>
    %5 = arith.extui %4 : vector<1x128xi1> to vector<1x128xi32>
    %6 = arith.sitofp %5 : vector<1x128xi32> to vector<1x128xf32>
    %c0_i32 = arith.constant 0 : i32
    %7 = vector.broadcast %c0_i32 : i32 to vector<1x128xi32>
    %8 = arith.cmpi ne, %2, %7 : vector<1x128xi32>
    %9 = arith.extui %8 : vector<1x128xi1> to vector<1x128xi32>
    %10 = arith.sitofp %9 : vector<1x128xi32> to vector<1x128xf32>
    %c1_i32 = arith.constant 1 : i32
    %11 = arith.subi %1, %c1_i32 : i32
    %12 = vector.broadcast %11 : i32 to vector<1x128xi32>
    %13 = arith.cmpi ne, %2, %12 : vector<1x128xi32>
    %14 = arith.extui %13 : vector<1x128xi1> to vector<1x128xi32>
    %15 = arith.sitofp %14 : vector<1x128xi32> to vector<1x128xf32>
    %cst = arith.constant 1.000000e+00 : f32
    %16 = vector.broadcast %cst : f32 to vector<1x128xf32>
    %17 = arith.subf %16, %10 : vector<1x128xf32>
    %cst_0 = arith.constant 1.000000e+00 : f32
    %18 = vector.broadcast %cst_0 : f32 to vector<1x128xf32>
    %19 = arith.subf %18, %15 : vector<1x128xf32>
    %20 = tpu.iota {dimensions = array<i32: 1>} : vector<1x4xi32>
    %21 = vector.broadcast %0 : i32 to vector<1x4xi32>
    %22 = arith.cmpi eq, %20, %21 : vector<1x4xi32>
    %23 = arith.extui %22 : vector<1x4xi1> to vector<1x4xi32>
    %24 = arith.sitofp %23 : vector<1x4xi32> to vector<1x4xf32>
    %c0_1 = arith.constant 0 : index
    %c0_2 = arith.constant 0 : index
    %25 = vector.load %arg4[%c0_1, %c0_2] : memref<96x4xf32, #tpu.memory_space<vmem>>, vector<96x4xf32>
    %26 = vector.broadcast %24 : vector<1x4xf32> to vector<96x4xf32>
    %27 = arith.mulf %25, %26 : vector<96x4xf32>
    %cst_3 = arith.constant dense<0.000000e+00> : vector<96xf32>
    %28 = vector.multi_reduction <add>, %27, %cst_3 [1] : vector<96x4xf32> to vector<96xf32>
    %29 = vector.shape_cast %28 : vector<96xf32> to vector<96x1xf32>
    %30 = vector.extract_strided_slice %29 {offsets = [0, 0], sizes = [32, 1], strides = [1, 1]} : vector<96x1xf32> to vector<32x1xf32>
    %31 = vector.extract_strided_slice %29 {offsets = [32, 0], sizes = [32, 1], strides = [1, 1]} : vector<96x1xf32> to vector<32x1xf32>
    %32 = vector.extract_strided_slice %29 {offsets = [64, 0], sizes = [32, 1], strides = [1, 1]} : vector<96x1xf32> to vector<32x1xf32>
    %c0_4 = arith.constant 0 : index
    %c0_5 = arith.constant 0 : index
    %33 = vector.load %arg1[%c0_4, %c0_5] : memref<1x128xi32, #tpu.memory_space<vmem>>, vector<1x128xi32>
    %34 = tpu.iota {dimensions = array<i32: 0>} : vector<40x128xi32>
    %35 = vector.broadcast %33 : vector<1x128xi32> to vector<40x128xi32>
    %36 = arith.cmpi eq, %34, %35 : vector<40x128xi32>
    %37 = arith.extui %36 : vector<40x128xi1> to vector<40x128xi32>
    %38 = arith.sitofp %37 : vector<40x128xi32> to vector<40x128xf32>
    %39 = vector.broadcast %6 : vector<1x128xf32> to vector<40x128xf32>
    %40 = arith.mulf %38, %39 : vector<40x128xf32>
    %c1_i32_6 = arith.constant 1 : i32
    %41 = tpu.dynamic_rotate %40 by %c1_i32_6 dim 1 : vector<40x128xf32>, i32 -> vector<40x128xf32>
    %42 = vector.broadcast %10 : vector<1x128xf32> to vector<40x128xf32>
    %43 = arith.mulf %41, %42 : vector<40x128xf32>
    %c127_i32 = arith.constant 127 : i32
    %44 = tpu.dynamic_rotate %40 by %c127_i32 dim 1 : vector<40x128xf32>, i32 -> vector<40x128xf32>
    %45 = vector.broadcast %15 : vector<1x128xf32> to vector<40x128xf32>
    %46 = arith.mulf %44, %45 : vector<40x128xf32>
    %47 = tpu.concatenate %43, %40, %46 in 0 : vector<40x128xf32>, vector<40x128xf32>, vector<40x128xf32> -> vector<120x128xf32>
    %c0_7 = arith.constant 0 : index
    %c0_8 = arith.constant 0 : index
    %48 = vector.load %arg2[%c0_7, %c0_8] : memref<32x120xf32, #tpu.memory_space<vmem>>, vector<32x120xf32>
    %cst_9 = arith.constant dense<0.000000e+00> : vector<32x128xf32>
    %49 = tpu.matmul %48, %47, %cst_9 {dimension_numbers = #tpu.dot_dimension_numbers<[1], [0], [0], [1], [0, 0, 1, 1], [], []>, precision = #tpu.contract_precision<fp32>} : vector<32x120xf32>, vector<120x128xf32>, vector<32x128xf32> -> vector<32x128xf32>
    %50 = vector.broadcast %30 : vector<32x1xf32> to vector<32x128xf32>
    %51 = arith.addf %49, %50 : vector<32x128xf32>
    %52 = vector.broadcast %31 : vector<32x1xf32> to vector<32x128xf32>
    %53 = vector.broadcast %17 : vector<1x128xf32> to vector<32x128xf32>
    %54 = arith.mulf %52, %53 : vector<32x128xf32>
    %55 = arith.subf %51, %54 : vector<32x128xf32>
    %56 = vector.broadcast %32 : vector<32x1xf32> to vector<32x128xf32>
    %57 = vector.broadcast %19 : vector<1x128xf32> to vector<32x128xf32>
    %58 = arith.mulf %56, %57 : vector<32x128xf32>
    %59 = arith.subf %55, %58 : vector<32x128xf32>
    %cst_10 = arith.constant 0.000000e+00 : f32
    %60 = vector.broadcast %cst_10 : f32 to vector<32x128xf32>
    %61 = arith.maximumf %59, %60 : vector<32x128xf32>
    %62 = vector.broadcast %6 : vector<1x128xf32> to vector<32x128xf32>
    %63 = arith.mulf %61, %62 : vector<32x128xf32>
    %c1_i32_11 = arith.constant 1 : i32
    %64 = tpu.dynamic_rotate %63 by %c1_i32_11 dim 1 : vector<32x128xf32>, i32 -> vector<32x128xf32>
    %65 = vector.broadcast %10 : vector<1x128xf32> to vector<32x128xf32>
    %66 = arith.mulf %64, %65 : vector<32x128xf32>
    %c127_i32_12 = arith.constant 127 : i32
    %67 = tpu.dynamic_rotate %63 by %c127_i32_12 dim 1 : vector<32x128xf32>, i32 -> vector<32x128xf32>
    %68 = vector.broadcast %15 : vector<1x128xf32> to vector<32x128xf32>
    %69 = arith.mulf %67, %68 : vector<32x128xf32>
    %70 = tpu.concatenate %66, %63, %69 in 0 : vector<32x128xf32>, vector<32x128xf32>, vector<32x128xf32> -> vector<96x128xf32>
    %c0_13 = arith.constant 0 : index
    %c0_14 = arith.constant 0 : index
    %71 = vector.load %arg5[%c0_13, %c0_14] : memref<32x3xf32, #tpu.memory_space<vmem>>, vector<32x1xf32>
    %c0_15 = arith.constant 0 : index
    %c0_16 = arith.constant 0 : index
    %72 = vector.load %arg3[%c0_15, %c0_16] : memref<32x96xf32, #tpu.memory_space<vmem>>, vector<32x96xf32>
    %cst_17 = arith.constant dense<0.000000e+00> : vector<32x128xf32>
    %73 = tpu.matmul %72, %70, %cst_17 {dimension_numbers = #tpu.dot_dimension_numbers<[1], [0], [0], [1], [0, 0, 1, 1], [], []>, precision = #tpu.contract_precision<fp32>} : vector<32x96xf32>, vector<96x128xf32>, vector<32x128xf32> -> vector<32x128xf32>
    %74 = vector.broadcast %71 : vector<32x1xf32> to vector<32x128xf32>
    %75 = arith.addf %73, %74 : vector<32x128xf32>
    %cst_18 = arith.constant 0.000000e+00 : f32
    %76 = vector.broadcast %cst_18 : f32 to vector<32x128xf32>
    %77 = arith.maximumf %75, %76 : vector<32x128xf32>
    %c0_19 = arith.constant 0 : index
    %c1_20 = arith.constant 1 : index
    %78 = vector.load %arg5[%c0_19, %c1_20] : memref<32x3xf32, #tpu.memory_space<vmem>>, vector<32x1xf32>
    %c0_21 = arith.constant 0 : index
    %c2 = arith.constant 2 : index
    %79 = vector.load %arg5[%c0_21, %c2] : memref<32x3xf32, #tpu.memory_space<vmem>>, vector<1x1xf32>
    %80 = vector.broadcast %78 : vector<32x1xf32> to vector<32x128xf32>
    %81 = arith.mulf %77, %80 : vector<32x128xf32>
    %cst_22 = arith.constant dense<0.000000e+00> : vector<128xf32>
    %82 = vector.multi_reduction <add>, %81, %cst_22 [0] : vector<32x128xf32> to vector<128xf32>
    %83 = vector.shape_cast %82 : vector<128xf32> to vector<1x128xf32>
    %84 = vector.broadcast %79 : vector<1x1xf32> to vector<1x128xf32>
    %85 = arith.addf %83, %84 : vector<1x128xf32>
    %c0_23 = arith.constant 0 : index
    %c0_24 = arith.constant 0 : index
    %86 = vector.load %arg6[%c0_23, %c0_24] : memref<1x128xf32, #tpu.memory_space<vmem>>, vector<1x128xf32>
    tpu.vector_store %arg6[%c0_23, %c0_24], %85 {strides = array<i32>} : memref<1x128xf32, #tpu.memory_space<vmem>>, vector<1x128xf32>,
    return
  }
}

</mosaic_0001>

<bundles_post_ra>
// kernel: _forward_padded.1
= control target key start
LH: loop header
LB: loop body
LE: loop exit
PB: predicated region body
PF: predicated region fallthrough
CT: control target
= control target key end

     0   :  { %11 = vsyncpa [#allocation4], 0  ;;  %s3574_s0 = inlined_call_operand.vmem [shape: s32[2], index: 0, kind: input, shape index: {}]   ;;  %s3575_s1 = inlined_call_operand.vmem [shape: s32[1,128], index: 1, kind: input, shape index: {}]   ;;  %s3576_s2 = inlined_call_operand.vmem [shape: f32[32,120], index: 2, kind: input, shape index: {}]   ;;  %s3577_s3 = inlined_call_operand.vmem [shape: f32[32,96], index: 3, kind: input, shape index: {}]   ;;  %s3578_s4 = inlined_call_operand.vmem [shape: f32[96,4], index: 4, kind: input, shape index: {}]   ;;  %s3579_s5 = inlined_call_operand.vmem [shape: f32[32,3], index: 5, kind: input, shape index: {}]   ;;  %s3580_s6 = inlined_call_operand.hbm [shape: f32[1,128], index: 6, kind: output, shape index: {}]  }
   0x1   :  { %12 = vsyncpa [#allocation3], 0  ;;  %s19_s23 = sshll.u32 %s3574_s0, 4  ;;  %s20_s23 = int_to_ptr.vmem [resolvable:$true] %s19_s23 }
   0x2   :  { %s2821_s24 = scalar_lea.vmem %s20_s23, 16  ;;  %p2826_p1 = scmp.lt.s32.totalorder %s20_s23, %s20_s23 }
   0x3   :  { %p2822_p0 = scmp.ne.s32.totalorder %s20_s23, %s2821_s24  ;;  %p2827_p2 = scmp.lt.s32.totalorder %s2821_s24, %s2821_s24 }
   0x5   :  { %p2828_p3 = por %p2827_p2, %p2826_p1 }
   0x7   :  { %p2829_p4 = pnand %p2828_p3, %p2822_p0 }
   0x9   :  { %2832 = shalt.err (!%p2829_p4)
}
   0xa   :  { %s2859_s25 = smov [#allocation2]  }
   0xb   :  { %22 = dma.vmem_to_smem %s20_s23, 16, %s2859_s25, [#allocation4]  }
   0xc   :  { %2855 = dma.done.wait [#allocation4], 16  }
   0xd   :  { %2856 = vsyncadd [#allocation4], 4294967280 }
   0xe   :  { %36 = sfence }
   0xf   :  { %s2905_s26 = sld [smem:[#allocation2 + $0x1]]  ;;  %v39_v0 = vlaneseq  ;;  %v1824_v1 = vld [vmem:[%s3575_s1] ss:$0 sm:$0xff]  ;;  %s37_s0 = sld [smem:[#allocation2]]  ;;  %v2860_v7 = vmov 0.0   ;;  %vm185_vm9 = vcmask 982016  }
  0x10   :  { %s2861_s1 = smov 1   ;;  %s2862_s30 = smov 127   ;;  %v181_v50 = vld [vmem:[%s3576_s2] sm:$0xff]  ;;  %vm83_vm10 = vcmask 31744   ;;  %vm1031_vm11 = vcmask 785408  }
  0x11   :  { %v122_v2 = vshrl.u32 %v39_v0, 7  ;;  %v40_v3 = vand.u32 127, %v39_v0  ;;  %v2975_v51 = vsel %vm185_vm9, %v181_v50, 0 }
  0x12   :  { %v2978_v52 = vand.u32 4294901760, %v2975_v51 }
  0x13   :  { %v124_v4 = vadd.s32 16, %v122_v2  ;;  %vm131_vm0 = vcmp.eq.s32.totalorder %v122_v2, %v1824_v1  ;;  %v125_v5 = vadd.s32 24, %v122_v2  ;;  %v123_v6 = vadd.s32 8, %v122_v2 }
  0x14   :  { %v1825_v8 = vsel %vm131_vm0, 1.0, %v2860_v7  ;;  %v126_v9 = vadd.s32 32, %v122_v2  ;;  %vm45_vm5 = vcmp.ne.s32.totalorder %v40_v3, 0  ;;  %2106 = vmatprep.mubr.f32.mxu0 %v2978_v52 }
  0x15   :  { %v41_v10 = vstv %s2905_s26  ;;  %vm133_vm1 = vcmp.eq.s32.totalorder %v124_v4, %v1824_v1  ;;  %vm134_vm2 = vcmp.eq.s32.totalorder %v125_v5, %v1824_v1  ;;  %vm132_vm3 = vcmp.eq.s32.totalorder %v123_v6, %v1824_v1  ;;  %s1821_s29 = sadd.s32 4294967295, %s2905_s26 }
  0x16   :  { %vm42_vm4 = vcmp.lt.s32.totalorder %v40_v3, %v41_v10  ;;  %v1827_v11 = vsel %vm133_vm1, 1.0, %v2860_v7  ;;  %v55_v12 = vstv %s37_s0  ;;  %v1828_v14 = vsel %vm134_vm2, 1.0, %v2860_v7 }
  0x17   :  { %v2911_v13 = vsel %vm42_vm4, 1.0, %v2860_v7  ;;  %vm56_vm6 = vcmp.eq.s32.totalorder %v40_v3, %v55_v12  ;;  %v1826_v15 = vsel %vm132_vm3, 1.0, %v2860_v7  ;;  %vm135_vm7 = vcmp.eq.s32.totalorder %v126_v9, %v1824_v1 }
  0x18   :  { %v148_v16 = vmul.f32 %v1827_v11, %v2911_v13  ;;  %v2914_v17 = vsel %vm56_vm6, 1.0, %v2860_v7  ;;  %v2917_v18 = vmul.f32 %v1825_v8, %v2911_v13  ;;  %v2919_v19 = vsel %vm45_vm5, 1.0, %v2860_v7 }
  0x19   :  { %v149_v20 = vmul.f32 %v1828_v14, %v2911_v13  ;;  %v147_v21 = vmul.f32 %v1826_v15, %v2911_v13  ;;  %v1829_v22 = vsel %vm135_vm7, 1.0, %v2860_v7  ;;  %v49_v26 = vstv %s1821_s29 }
  0x1a   :  { %155 = vrot.lane.b32.xlu1 %v148_v16, %s2861_s1  ;;  %151 = vrot.lane.b32.xlu0 %v2917_v18, %s2861_s1  ;;  %v220_v23 = vand.u32 4294901760, %v148_v16  ;;  %v150_v25 = vmul.f32 %v1829_v22, %v2911_v13  ;;  %vm50_vm8 = vcmp.ne.s32.totalorder %v40_v3, %v49_v26  ;;  %v214_v57 = vand.u32 4294901760, %v2917_v18 }
  0x1b   :  { %v217_v24 = vand.u32 4294901760, %v147_v21  ;;  %v223_v27 = vand.u32 4294901760, %v149_v20  ;;  %v2930_v29 = vsel %vm50_vm8, 1.0, %v2860_v7 }
  0x1c   :  { %v226_v28 = vand.u32 4294901760, %v150_v25  ;;  %v2939_v32 = vsub.f32 %v148_v16, %v220_v23  ;;  %v2993_v0 = vsub.f32 %v2917_v18, %v214_v57 }
  0x1d   :  { %v2932_v30 = vpack.c.bf16 %v220_v23, %v217_v24  ;;  %v2937_v31 = vsub.f32 %v147_v21, %v217_v24  ;;  %v2953_v38 = vsub.f32 %v149_v20, %v223_v27 }
  0x1e   :  { %157 = vrot.lane.b32.xlu1 %v149_v20, %s2861_s1  ;;  %153 = vrot.lane.b32.xlu0 %v147_v21, %s2861_s1  ;;  %v370_v34 = vand.u32 4294901760, %v2939_v32  ;;  %v2943_v35 = vpack.c.bf16 %v226_v28, %v223_v27  ;;  %v2955_v39 = vsub.f32 %v150_v25, %v226_v28  ;;  %v356_v11 = vand.u32 4294901760, %v2993_v0 }
  0x1f   :  { %v363_v33 = vand.u32 4294901760, %v2937_v31  ;;  %v3582_v42 = vand.u32 4294901760, %v2953_v38  ;;  %v2983_v53 = vpack.c.bf16 %v2939_v32, %v2937_v31 }
  0x20   :  { %v371_v37 = vsub.f32 %v2939_v32, %v370_v34  ;;  %v3581_v43 = vand.u32 4294901760, %v2955_v39  ;;  %v2987_v54 = vpack.c.bf16 %v2955_v39, %v2953_v38 }
  0x21   :  { %v364_v36 = vsub.f32 %v2937_v31, %v363_v33  ;;  %v378_v45 = vsub.f32 %v2953_v38, %v3582_v42 }
  0x22   :  { %159 = vrot.lane.b32.xlu0 %v150_v25, %s2861_s1  ;;  %166 = vrot.lane.b32.xlu1 %v2917_v18, %s2862_s30  ;;  %v372_v41 = vand.u32 4294901760, %v371_v37  ;;  %v385_v46 = vsub.f32 %v2955_v39, %v3581_v43 }
  0x23   :  { %v365_v40 = vand.u32 4294901760, %v364_v36  ;;  %v379_v47 = vand.u32 4294901760, %v378_v45  ;;  %v357_v36 = vsub.f32 %v2993_v0, %v356_v11 }
  0x24   :  { %v386_v48 = vand.u32 4294901760, %v385_v46 }
  0x25   :  { %v2961_v44 = vpack.c.bf16 %v372_v41, %v365_v40 }
  0x26   :  { %168 = vrot.lane.b32.xlu0 %v147_v21, %s2862_s30  ;;  %170 = vrot.lane.b32.xlu1 %v148_v16, %s2862_s30  ;;  %v2969_v49 = vpack.c.bf16 %v386_v48, %v379_v47 }
  0x2a   :  { %172 = vrot.lane.b32.xlu0 %v149_v20, %s2862_s30  ;;  %174 = vrot.lane.b32.xlu1 %v150_v25, %s2862_s30 }
  0x8c   :  { %v156_v55 = vpop.permute.xlu1 %155  ;;  %v152_v56 = vpop.permute.xlu0 %151 }
  0x8d   :  { %v163_v58 = vmul.f32 %v2919_v19, %v156_v55  ;;  %v161_v59 = vmul.f32 %v2919_v19, %v152_v56 }
  0x8f   :  { %v205_v60 = vand.u32 4294901760, %v163_v58  ;;  %v199_v61 = vand.u32 4294901760, %v161_v59 }
  0x90   :  { %v158_v62 = vpop.permute.xlu1 %157  ;;  %v154_v63 = vpop.permute.xlu0 %153 }
  0x91   :  { %v2995_v1 = vsub.f32 %v163_v58, %v205_v60  ;;  %v2997_v2 = vsub.f32 %v161_v59, %v199_v61  ;;  %v164_v3 = vmul.f32 %v2919_v19, %v158_v62  ;;  %v162_v4 = vmul.f32 %v2919_v19, %v154_v63 }
  0x93   :  { %v208_v5 = vand.u32 4294901760, %v164_v3  ;;  %v202_v6 = vand.u32 4294901760, %v162_v4  ;;  %v321_v7 = vand.u32 4294901760, %v2997_v2  ;;  %v335_v8 = vand.u32 4294901760, %v2995_v1 }
  0x94   :  { %v160_v9 = vpop.permute.xlu0 %159  ;;  %v167_v10 = vpop.permute.xlu1 %166 }
  0x95   :  { %v3004_v12 = vsub.f32 %v164_v3, %v208_v5  ;;  %v3006_v14 = vpack.c.bf16 %v202_v6, %v199_v61  ;;  %v3008_v15 = vsub.f32 %v162_v4, %v202_v6  ;;  %v165_v16 = vmul.f32 %v2919_v19, %v160_v9 }
  0x96   :  { %v322_v18 = vsub.f32 %v2997_v2, %v321_v7  ;;  %v3013_v20 = vmul.f32 %v2930_v29, %v167_v10  ;;  %v3015_v21 = vpack.c.bf16 %v208_v5, %v205_v60  ;;  %v336_v27 = vsub.f32 %v2995_v1, %v335_v8 }
  0x97   :  { %v342_v22 = vand.u32 4294901760, %v3004_v12  ;;  %2437 = vmatprep.subr.bf16.mxu1 %v3006_v14  ;;  %v328_v23 = vand.u32 4294901760, %v3008_v15  ;;  %v211_v24 = vand.u32 4294901760, %v165_v16 }
  0x98   :  { %2439 = vmatpush3.bf16.msra.mxu1 %v3006_v14  ;;  %v229_v25 = vand.u32 4294901760, %v3013_v20  ;;  %v169_v26 = vpop.permute.xlu0 %168  ;;  %v171_v28 = vpop.permute.xlu1 %170  ;;  %v323_v48 = vand.u32 4294901760, %v322_v18  ;;  %v337_v4 = vand.u32 4294901760, %v336_v27 }
  0x99   :  { %2441 = vmatprep.subr.bf16.mxu1 %v3015_v21  ;;  %v329_v37 = vsub.f32 %v3008_v15, %v328_v23  ;;  %v177_v40 = vmul.f32 %v2930_v29, %v169_v26  ;;  %v343_v41 = vsub.f32 %v3004_v12, %v342_v22  ;;  %v3031_v45 = vmul.f32 %v2930_v29, %v171_v28  ;;  %v183_v28 = vld [vmem:[%s3576_s2 + $0x10] sm:$0xff] }
  0x9a   :  { %v3033_v46 = vpack.c.bf16 %v214_v57, %v211_v24  ;;  %v3035_v47 = vsub.f32 %v165_v16, %v211_v24  ;;  %v3037_v50 = vpack.c.bf16 %v328_v23, %v321_v7  ;;  %v3040_v56 = vsub.f32 %v3013_v20, %v229_v25  ;;  %v182_v23 = vld [vmem:[%s3576_s2 + $0x8] sm:$0xff] }
  0x9b   :  { %v330_v55 = vand.u32 4294901760, %v329_v37  ;;  %v232_v58 = vand.u32 4294901760, %v177_v40  ;;  %v344_v59 = vand.u32 4294901760, %v343_v41  ;;  %v235_v61 = vand.u32 4294901760, %v3031_v45 }
  0x9c   :  { %v349_v60 = vand.u32 4294901760, %v3035_v47  ;;  %2443 = vmatpush3.bf16.msra.mxu1 %v3015_v21  ;;  %v173_v62 = vpop.permute.xlu0 %172  ;;  %v3045_v57 = vpack.c.bf16 %v342_v22, %v335_v8  ;;  %v391_v7 = vand.u32 4294901760, %v3040_v56  ;;  %v358_v8 = vand.u32 4294901760, %v357_v36  ;;  %v175_v22 = vpop.permute.xlu1 %174 }
  0x9d   :  { %2445 = vmatprep.subr.bf16.mxu1 %v3033_v46  ;;  %v2464_v63 = vpack.c.bf16 %v330_v55, %v323_v48  ;;  %v3048_v3 = vsub.f32 %v177_v40, %v232_v58  ;;  %v179_v5 = vmul.f32 %v2930_v29, %v173_v62  ;;  %v2468_v10 = vpack.c.bf16 %v344_v59, %v337_v4  ;;  %v184_v48 = vld [vmem:[%s3576_s2 + $0x18] sm:$0xff] }
  0x9e   :  { %v350_v6 = vsub.f32 %v3035_v47, %v349_v60  ;;  %v3058_v16 = vsub.f32 %v3031_v45, %v235_v61  ;;  %v3065_v24 = vsub.f32 %v2975_v51, %v2978_v52  ;;  %v180_v40 = vmul.f32 %v2930_v29, %v175_v22 }
  0x9f   :  { %2465 = vmatprep.subr.bf16.mxu0 %v2464_v63  ;;  %v398_v9 = vand.u32 4294901760, %v3048_v3  ;;  %v238_v18 = vand.u32 4294901760, %v179_v5  ;;  %v190_v41 = vsel %vm185_vm9, %v182_v23, 0  ;;  %v3087_v59 = vpack.c.bf16 %v232_v58, %v229_v25 }
  0xa0   :  { %2467 = vmatpush3.bf16.msra.mxu0 %v2464_v63  ;;  %2447 = vmatpush3.bf16.msra.mxu1 %v3033_v46  ;;  %v351_v20 = vand.u32 4294901760, %v350_v6  ;;  %v280_v36 = vand.u32 4294901760, %v3065_v24  ;;  %v405_v51 = vand.u32 4294901760, %v3058_v16  ;;  %v193_v62 = vsel %vm185_vm9, %v183_v28, 0 }
  0xa1   :  { %2469 = vmatprep.subr.bf16.mxu0 %v2468_v10  ;;  %2449 = vmatprep.subr.bf16.mxu1 %v2932_v30  ;;  %v3068_v26 = vpack.c.bf16 %v398_v9, %v391_v7  ;;  %v3070_v27 = vsub.f32 %v179_v5, %v238_v18  ;;  %v392_v63 = vsub.f32 %v3040_v56, %v391_v7  ;;  %v3092_v4 = vand.u32 4294901760, %v190_v41 }
  0xa2   :  { %v2472_v37 = vpack.c.bf16 %v358_v8, %v351_v20  ;;  %v281_v55 = vsub.f32 %v3065_v24, %v280_v36  ;;  %v399_v8 = vsub.f32 %v3048_v3, %v398_v9  ;;  %v196_v20 = vsel %vm185_vm9, %v184_v48, 0 }
  0xa3   :  { %v412_v45 = vand.u32 4294901760, %v3070_v27  ;;  %v3102_v25 = vsub.f32 %v190_v41, %v3092_v4  ;;  %v3104_v58 = vand.u32 4294901760, %v193_v62  ;;  %v3106_v7 = vpack.c.bf16 %v238_v18, %v235_v61 }
  0xa4   :  { %2471 = vmatpush3.bf16.msra.mxu0 %v2468_v10  ;;  %2451 = vmatpush3.bf16.msra.mxu1 %v2932_v30  ;;  %v282_v6 = vand.u32 4294901760, %v281_v55  ;;  %v3096_v10 = vand.u32 4294901760, %v180_v40  ;;  %v393_v22 = vand.u32 4294901760, %v392_v63  ;;  %v3110_v23 = vand.u32 4294901760, %v196_v20 }
  0xa5   :  { %2473 = vmatprep.subr.bf16.mxu0 %v2472_v37  ;;  %2453 = vmatprep.subr.bf16.mxu1 %v2943_v35  ;;  %v3094_v5 = vpack.c.bf16 %v412_v45, %v405_v51  ;;  %v3113_v9 = vsub.f32 %v193_v62, %v3104_v58  ;;  %v290_v28 = vand.u32 4294901760, %v3102_v25  ;;  %v400_v41 = vand.u32 4294901760, %v399_v8 }
  0xa6   :  { %2070 = vmatprep.mubr.f32.mxu1 %v282_v6  ;;  %v406_v61 = vsub.f32 %v3058_v16, %v405_v51  ;;  %v413_v18 = vsub.f32 %v3070_v27, %v412_v45  ;;  %v3124_v48 = vsub.f32 %v196_v20, %v3110_v23 }
  0xa7   :  { %v300_v55 = vand.u32 4294901760, %v3113_v9 }
  0xa8   :  { %2455 = vmatpush3.bf16.msra.mxu1 %v2943_v35  ;;  %2475 = vmatpush3.bf16.msra.mxu0 %v2472_v37  ;;  %v3117_v37 = vsub.f32 %v180_v40, %v3096_v10  ;;  %v291_v40 = vsub.f32 %v3102_v25, %v290_v28  ;;  %v310_v51 = vand.u32 4294901760, %v3124_v48  ;;  %v407_v62 = vand.u32 4294901760, %v406_v61  ;;  %v59_v61 = vld [vmem:[%s3578_s4] sm:$0xff] }
  0xa9   :  { %2457 = vmatprep.subr.bf16.mxu1 %v3087_v59  ;;  %2477 = vmatprep.subr.bf16.mxu0 %v2961_v44  ;;  %v301_v45 = vsub.f32 %v3113_v9, %v300_v55  ;;  %v414_v63 = vand.u32 4294901760, %v413_v18  ;;  %v63_v18 = vld [vmem:[%s3578_s4 + $0x20] sm:$0xff] }
  0xaa   :  { %v3137_v6 = vand.u32 4294901760, %v3117_v37  ;;  %v292_v8 = vand.u32 4294901760, %v291_v40  ;;  %v311_v20 = vsub.f32 %v3124_v48, %v310_v51  ;;  %v71_v40 = vmul.f32 %v2914_v17, %v59_v61 }
  0xab   :  { %v302_v43 = vand.u32 4294901760, %v301_v45  ;;  %v2488_v42 = vpack.c.bf16 %v414_v63, %v407_v62  ;;  %v60_v45 = vld [vmem:[%s3578_s4 + $0x8] sm:$0xff]  ;;  %v75_v63 = vmul.f32 %v2914_v17, %v63_v18 }
  0xac   :  { %2459 = vmatpush3.bf16.msra.mxu1 %v3087_v59  ;;  %2479 = vmatpush3.bf16.msra.mxu0 %v2961_v44  ;;  %v2484_v44 = vpack.c.bf16 %v400_v41, %v393_v22  ;;  %v420_v22 = vsub.f32 %v3117_v37, %v3137_v6  ;;  %v312_v41 = vand.u32 4294901760, %v311_v20  ;;  %v84_v62 = vsel %vm83_vm10, %v71_v40, 0.0  ;;  %v64_v20 = vld [vmem:[%s3578_s4 + $0x28] sm:$0xff]  ;;  %v65_v40 = vld [vmem:[%s3578_s4 + $0x30] sm:$0xff] }
  0xad   :  { %2461 = vmatprep.subr.bf16.mxu1 %v3106_v7  ;;  %2481 = vmatprep.subr.bf16.mxu0 %v2969_v49 }
  0xae   :  { %85 = vadd.xlane.f32.xlu0 %v84_v62  ;;  %v77_v62 = vmul.f32 %v2914_v17, %v65_v40  ;;  %v2516_v40 = vpack.c.bf16 %v3070_v27, %v3058_v16  ;;  %v54_v16 = vsub.f32 1.0, %v2930_v29 }
  0xb0   :  { %2463 = vmatpush3.bf16.msra.mxu1 %v3106_v7  ;;  %2483 = vmatpush3.bf16.msra.mxu0 %v2969_v49  ;;  %v421_v49 = vand.u32 4294901760, %v420_v22 }
  0xb1   :  { %2485 = vmatprep.subr.bf16.mxu0 %v2484_v44  ;;  %2068 = vmatprep.subr.mxu1 %v3096_v10 }
  0xb4   :  { %2069 = vmatpush3.msra.mxu1 %v3096_v10  ;;  %2487 = vmatpush3.bf16.msra.mxu0 %v2484_v44  ;;  %v72_v44 = vmul.f32 %v2914_v17, %v60_v45 }
  0xb5   :  { %2489 = vmatprep.subr.bf16.mxu0 %v2488_v42  ;;  %2071 = vmatmul.mubr.f32.vlgmr.msra.gmra.mrb[0].mxu1 %v292_v8  ;;  %v2496_v8 = vpack.c.bf16 %v3004_v12, %v2995_v1  ;;  %v76_v1 = vmul.f32 %v2914_v17, %v64_v20  ;;  %v2500_v12 = vpack.c.bf16 %v2993_v0, %v3035_v47  ;;  %v3583_v47 = vand.u32 4294901760, %v2953_v38 }
  0xb6   :  { %2073 = vmatprep.mubr.f32.mxu1 %v302_v43  ;;  %v2492_v43 = vpack.c.bf16 %v3008_v15, %v2997_v2  ;;  %v87_v22 = vsel %vm83_vm10, %v72_v44, 0.0  ;;  %v67_v15 = vld [vmem:[%s3578_s4 + $0x40] sm:$0xff]  ;;  %v3584_v0 = vand.u32 4294901760, %v2955_v39 }
  0xb7   :  { %88 = vadd.xlane.f32.xlu1 %v87_v22  ;;  %v79_v18 = vmul.f32 %v2914_v17, %v67_v15  ;;  %v99_v45 = vsel %vm83_vm10, %v76_v1, 0.0  ;;  %v66_v22 = vld [vmem:[%s3578_s4 + $0x38] sm:$0xff] }
  0xb8   :  { %2491 = vmatpush3.bf16.msra.mxu0 %v2488_v42  ;;  %v61_v42 = vld [vmem:[%s3578_s4 + $0x10] sm:$0xff]  ;;  %v78_v1 = vmul.f32 %v2914_v17, %v66_v22 }
  0xb9   :  { %2104 = vmatprep.subr.mxu0 %v421_v49  ;;  %2074 = vmatmul.mubr.f32.gmra.mrb[2].mxu1 %v312_v41  ;;  %v73_v2 = vmul.f32 %v2914_v17, %v61_v42  ;;  %v96_v41 = vsel %vm83_vm10, %v75_v63, 0.0  ;;  %v108_v44 = vsel %vm83_vm10, %v79_v18, 0.0  ;;  %v69_v63 = vld [vmem:[%s3578_s4 + $0x50] sm:$0xff] }
  0xba   :  { %97 = vadd.xlane.f32.xlu0 %v96_v41  ;;  %v81_v15 = vmul.f32 %v2914_v17, %v69_v63 }
  0xbb   :  { %v90_v61 = vsel %vm83_vm10, %v73_v2, 0.0  ;;  %v102_v2 = vsel %vm83_vm10, %v77_v62, 0.0 }
  0xbc   :  { %2105 = vmatpush3.msra.mxu0 %v421_v49  ;;  %v62_v49 = vld [vmem:[%s3578_s4 + $0x18] sm:$0xff]  ;;  %91 = vadd.xlane.f32.xlu1 %v90_v61  ;;  %v114_v61 = vsel %vm83_vm10, %v81_v15, 0.0 }
  0xbd   :  { %2493 = vmatprep.subr.bf16.mxu0 %v2492_v43  ;;  %2107 = vmatmul.mubr.f32.vlgmr.msra.gmra.mrb[0].mxu0 %v3092_v4  ;;  %v74_v42 = vmul.f32 %v2914_v17, %v62_v49  ;;  %v70_v49 = vld [vmem:[%s3578_s4 + $0x58] sm:$0xff] }
  0xbe   :  { %2495 = vmatpush3.bf16.msra.mxu0 %v2492_v43  ;;  %2109 = vmatprep.mubr.f32.mxu0 %v3104_v58  ;;  %v68_v43 = vld [vmem:[%s3578_s4 + $0x48] sm:$0xff]  ;;  %v82_v18 = vmul.f32 %v2914_v17, %v70_v49 }
  0xbf   :  { %2497 = vmatprep.subr.bf16.mxu0 %v2496_v8  ;;  %100 = vadd.xlane.f32.xlu0 %v99_v45  ;;  %v80_v20 = vmul.f32 %v2914_v17, %v68_v43  ;;  %v2556_v17 = vpack.c.bf16 %v356_v11, %v349_v60  ;;  %v2564_v11 = vpack.c.bf16 %v3584_v0, %v3583_v47 }
  0xc0   :  { %109 = vadd.xlane.f32.xlu1 %v108_v44 }
  0xc1   :  { %2110 = vmatmul.mubr.f32.gmra.mrb[2].mxu0 %v3110_v23  ;;  %v111_v41 = vsel %vm83_vm10, %v80_v20, 0.0 }
  0xc2   :  { %2499 = vmatpush3.bf16.msra.mxu0 %v2496_v8  ;;  %2142 = vmatprep.mubr.f32.mxu0 %v3065_v24  ;;  %v93_v8 = vsel %vm83_vm10, %v74_v42, 0.0 }
  0xc3   :  { %2501 = vmatprep.subr.bf16.mxu0 %v2500_v12  ;;  %94 = vadd.xlane.f32.xlu0 %v93_v8 }
  0xc4   :  { %103 = vadd.xlane.f32.xlu1 %v102_v2 }
  0xc6   :  { %2503 = vmatpush3.bf16.msra.mxu0 %v2500_v12  ;;  %v2512_v12 = vpack.c.bf16 %v3048_v3, %v3040_v56  ;;  %v117_v56 = vsel %vm83_vm10, %v82_v18, 0.0 }
  0xc7   :  { %2505 = vmatprep.subr.bf16.mxu0 %v2983_v53  ;;  %112 = vadd.xlane.f32.xlu0 %v111_v41 }
  0xc8   :  { %115 = vadd.xlane.f32.xlu1 %v114_v61 }
  0xca   :  { %2507 = vmatpush3.bf16.msra.mxu0 %v2983_v53  ;;  %v105_v53 = vsel %vm83_vm10, %v78_v1, 0.0 }
  0xcb   :  { %2509 = vmatprep.subr.bf16.mxu0 %v2987_v54  ;;  %106 = vadd.xlane.f32.xlu0 %v105_v53 }
  0xce   :  { %2511 = vmatpush3.bf16.msra.mxu0 %v2987_v54  ;;  %v2560_v54 = vpack.c.bf16 %v370_v34, %v363_v33 }
  0xcf   :  { %2513 = vmatprep.subr.bf16.mxu0 %v2512_v12  ;;  %118 = vadd.xlane.f32.xlu0 %v117_v56 }
  0xd2   :  { %2515 = vmatpush3.bf16.msra.mxu0 %v2512_v12 }
  0xd3   :  { %2517 = vmatprep.subr.bf16.mxu0 %v2516_v40 }
  0xd6   :  { %2519 = vmatpush3.bf16.msra.mxu0 %v2516_v40 }
  0xd7   :  { %2140 = vmatprep.subr.mxu0 %v3117_v37 }
  0xda   :  { %2141 = vmatpush3.msra.mxu0 %v3117_v37 }
  0xdb   :  { %2521 = vmatprep.subr.bf16.mxu0 %v3006_v14  ;;  %2143 = vmatmul.mubr.f32.vlgmr.msra.gmra.mrb[0].mxu0 %v3102_v25 }
  0xdc   :  { %2523 = vmatpush3.bf16.msra.mxu0 %v3006_v14  ;;  %2145 = vmatprep.mubr.f32.mxu0 %v3113_v9 }
  0xdd   :  { %2525 = vmatprep.subr.bf16.mxu0 %v3015_v21 }
  0xdf   :  { %2146 = vmatmul.mubr.f32.gmra.mrb[2].mxu0 %v3124_v48 }
  0xe0   :  { %2527 = vmatpush3.bf16.msra.mxu0 %v3015_v21  ;;  %2178 = vmatprep.mubr.f32.mxu0 %v280_v36 }
  0xe1   :  { %2529 = vmatprep.subr.bf16.mxu0 %v3033_v46 }
  0xe4   :  { %2531 = vmatpush3.bf16.msra.mxu0 %v3033_v46 }
  0xe5   :  { %2533 = vmatprep.subr.bf16.mxu0 %v2932_v30 }
  0xe8   :  { %2535 = vmatpush3.bf16.msra.mxu0 %v2932_v30 }
  0xe9   :  { %2537 = vmatprep.subr.bf16.mxu0 %v2943_v35 }
  0xec   :  { %2539 = vmatpush3.bf16.msra.mxu0 %v2943_v35 }
  0xed   :  { %2541 = vmatprep.subr.bf16.mxu0 %v3087_v59 }
  0xf0   :  { %2543 = vmatpush3.bf16.msra.mxu0 %v3087_v59 }
  0xf1   :  { %2545 = vmatprep.subr.bf16.mxu0 %v3106_v7 }
  0xf4   :  { %2547 = vmatpush3.bf16.msra.mxu0 %v3106_v7 }
  0xf5   :  { %2176 = vmatprep.subr.mxu0 %v3096_v10 }
  0xf8   :  { %2177 = vmatpush3.msra.mxu0 %v3096_v10 }
  0xf9   :  { %2549 = vmatprep.subr.bf16.mxu0 %v3037_v50  ;;  %2179 = vmatmul.mubr.f32.vlgmr.msra.gmra.mrb[0].mxu0 %v290_v28 }
  0xfa   :  { %2551 = vmatpush3.bf16.msra.mxu0 %v3037_v50  ;;  %2181 = vmatprep.mubr.f32.mxu0 %v300_v55 }
  0xfb   :  { %2553 = vmatprep.subr.bf16.mxu0 %v3045_v57 }
  0xfd   :  { %2182 = vmatmul.mubr.f32.gmra.mrb[2].mxu0 %v310_v51 }
  0xfe   :  { %2555 = vmatpush3.bf16.msra.mxu0 %v3045_v57  ;;  %2214 = vmatprep.mubr.f32.mxu0 %v2978_v52  ;;  %v53_v57 = vsub.f32 1.0, %v2919_v19 }
  0xff   :  { %2557 = vmatprep.subr.bf16.mxu0 %v2556_v17 }
 0x102   :  { %2559 = vmatpush3.bf16.msra.mxu0 %v2556_v17 }
 0x103   :  { %2561 = vmatprep.subr.bf16.mxu0 %v2560_v54 }
 0x106   :  { %2563 = vmatpush3.bf16.msra.mxu0 %v2560_v54 }
 0x107   :  { %2565 = vmatprep.subr.bf16.mxu0 %v2564_v11 }
 0x10a   :  { %2567 = vmatpush3.bf16.msra.mxu0 %v2564_v11 }
 0x10b   :  { %2569 = vmatprep.subr.bf16.mxu0 %v3068_v26 }
 0x10e   :  { %2571 = vmatpush3.bf16.msra.mxu0 %v3068_v26 }
 0x10f   :  { %2573 = vmatprep.subr.bf16.mxu0 %v3094_v5 }
 0x112   :  { %2575 = vmatpush3.bf16.msra.mxu0 %v3094_v5 }
 0x113   :  { %2212 = vmatprep.subr.mxu0 %v3137_v6 }
 0x116   :  { %2213 = vmatpush3.msra.mxu0 %v3137_v6 }
 0x117   :  { %2577 = vmatprep.subr.bf16.mxu0 %v3006_v14  ;;  %2215 = vmatmul.mubr.f32.vlgmr.msra.gmra.mrb[0].mxu0 %v3092_v4 }
 0x118   :  { %2579 = vmatpush3.bf16.msra.mxu0 %v3006_v14  ;;  %2217 = vmatprep.mubr.f32.mxu0 %v3104_v58 }
 0x119   :  { %2581 = vmatprep.subr.bf16.mxu0 %v3015_v21 }
 0x11b   :  { %2218 = vmatmul.mubr.f32.gmra.mrb[2].mxu0 %v3110_v23 }
 0x11c   :  { %2583 = vmatpush3.bf16.msra.mxu0 %v3015_v21  ;;  %2250 = vmatprep.mubr.f32.mxu0 %v2978_v52 }
 0x11d   :  { %2585 = vmatprep.subr.bf16.mxu0 %v3033_v46 }
 0x120   :  { %2587 = vmatpush3.bf16.msra.mxu0 %v3033_v46 }
 0x121   :  { %2589 = vmatprep.subr.bf16.mxu0 %v2932_v30 }
 0x124   :  { %2591 = vmatpush3.bf16.msra.mxu0 %v2932_v30 }
 0x125   :  { %2593 = vmatprep.subr.bf16.mxu0 %v2943_v35 }
 0x128   :  { %2595 = vmatpush3.bf16.msra.mxu0 %v2943_v35 }
 0x129   :  { %2597 = vmatprep.subr.bf16.mxu0 %v3087_v59 }
 0x12c   :  { %2599 = vmatpush3.bf16.msra.mxu0 %v3087_v59 }
 0x12d   :  { %2601 = vmatprep.subr.bf16.mxu0 %v3106_v7 }
 0x130   :  { %2603 = vmatpush3.bf16.msra.mxu0 %v3106_v7 }
 0x131   :  { %2248 = vmatprep.subr.mxu0 %v3096_v10 }
 0x134   :  { %2249 = vmatpush3.msra.mxu0 %v3096_v10 }
 0x135   :  { %2251 = vmatmul.mubr.f32.vlgmr.msra.gmra.mrb[0].mxu0 %v3092_v4 }
 0x136   :  { %2253 = vmatprep.mubr.f32.mxu0 %v3104_v58 }
 0x139   :  { %2254 = vmatmul.mubr.f32.gmra.mrb[2].mxu0 %v3110_v23 }
 0x13b   :  { %v86_v34 = vpop.xlane.xlu0 %85 }
 0x144   :  { %v89_v39 = vpop.xlane.xlu1 %88 }
 0x147   :  { %v98_v35 = vpop.xlane.xlu0 %97 }
 0x148   :  { %v955_v5 = vmul.f32 %v98_v35, %v53_v57 }
 0x149   :  { %v92_v14 = vpop.xlane.xlu1 %91 }
 0x14c   :  { %v101_v38 = vpop.xlane.xlu0 %100 }
 0x14d   :  { %v110_v46 = vpop.xlane.xlu1 %109  ;;  %v956_v27 = vmul.f32 %v101_v38, %v53_v57 }
 0x14e   :  { %v963_v37 = vmul.f32 %v110_v46, %v54_v16 }
 0x150   :  { %v95_v52 = vpop.xlane.xlu0 %94 }
 0x151   :  { %v104_v60 = vpop.xlane.xlu1 %103 }
 0x152   :  { %v957_v44 = vmul.f32 %v104_v60, %v53_v57 }
 0x154   :  { %v113_v21 = vpop.xlane.xlu0 %112 }
 0x155   :  { %v964_v36 = vmul.f32 %v113_v21, %v54_v16  ;;  %v116_v9 = vpop.xlane.xlu1 %115 }
 0x156   :  { %v965_v63 = vmul.f32 %v116_v9, %v54_v16 }
 0x158   :  { %v107_v50 = vpop.xlane.xlu0 %106 }
 0x159   :  { %v958_v23 = vmul.f32 %v107_v50, %v53_v57 }
 0x15c   :  { %v119_v25 = vpop.xlane.xlu0 %118 }
 0x15d   :  { %v966_v42 = vmul.f32 %v119_v25, %v54_v16 }
 0x188   :  { %v2072_v30 = vpop.f32.mrb[0].mxu1 }
 0x189   :  { %v284_v31 = vpop.f32.mrb[1].mxu1  ;;  %v295_v3 = vadd.f32 %v2072_v30, %v89_v39 }
 0x18a   :  { %v285_v24 = vadd.f32 %v284_v31, %v86_v34 }
 0x18c   :  { %v2075_v32 = vpop.f32.mrb[2].mxu1 }
 0x18d   :  { %v304_v33 = vpop.f32.mrb[3].mxu1  ;;  %v315_v58 = vadd.f32 %v2075_v32, %v95_v52 }
 0x18e   :  { %v305_v28 = vadd.f32 %v304_v33, %v92_v14 }
 0x208   :  { %v2252_v26 = vpop.f32.mrb[0].mxu0 }
 0x209   :  { %v2761_v59 = vadd.f32 %v2252_v26, %v295_v3  ;;  %v933_v4 = vpop.f32.mrb[1].mxu0  ;;  %v1007_v26 = vld [vmem:[%s3577_s3] sm:$0xff] }
 0x20a   :  { %v2763_v10 = vadd.f32 %v933_v4, %v285_v24 }
 0x20b   :  { %v960_v7 = vsub.f32 %v2761_v59, %v956_v27 }
 0x20c   :  { %v959_v48 = vsub.f32 %v2763_v10, %v955_v5  ;;  %v2255_v55 = vpop.f32.mrb[2].mxu0 }
 0x20d   :  { %v968_v51 = vsub.f32 %v960_v7, %v964_v36  ;;  %v2765_v6 = vadd.f32 %v2255_v55, %v315_v58  ;;  %v945_v45 = vpop.f32.mrb[3].mxu0  ;;  %v1033_v36 = vsel %vm1031_vm11, %v1007_v26, 0 }
 0x20e   :  { %v967_v43 = vsub.f32 %v959_v48, %v963_v37  ;;  %v2767_v62 = vadd.f32 %v945_v45, %v305_v28  ;;  %v3332_v59 = vand.u32 4294901760, %v1033_v36 }
 0x20f   :  { %v972_v8 = vmax.f32 %v968_v51, 0.0  ;;  %v962_v20 = vsub.f32 %v2765_v6, %v958_v23 }
 0x210   :  { %v971_v22 = vmax.f32 %v967_v43, 0.0  ;;  %v961_v2 = vsub.f32 %v2767_v62, %v957_v44  ;;  %v3338_v5 = vsub.f32 %v1033_v36, %v3332_v59  ;;  %2430 = vmatprep.mubr.f32.mxu0 %v3332_v59 }
 0x211   :  { %v976_v15 = vmul.f32 %v2911_v13, %v972_v8  ;;  %v970_v41 = vsub.f32 %v962_v20, %v966_v42 }
 0x212   :  { %v975_v1 = vmul.f32 %v2911_v13, %v971_v22  ;;  %v969_v12 = vsub.f32 %v961_v2, %v965_v63  ;;  %v1123_v10 = vand.u32 4294901760, %v3338_v5  ;;  %v1008_v2 = vld [vmem:[%s3577_s3 + $0x8] sm:$0xff] }
 0x213   :  { %v1060_v49 = vand.u32 4294901760, %v976_v15  ;;  %v974_v61 = vmax.f32 %v970_v41, 0.0  ;;  %981 = vrot.lane.b32.xlu0 %v976_v15, %s2861_s1 }
 0x214   :  { %v1057_v53 = vand.u32 4294901760, %v975_v1  ;;  %v973_v18 = vmax.f32 %v969_v12, 0.0  ;;  %979 = vrot.lane.b32.xlu1 %v975_v1, %s2861_s1  ;;  %v1124_v25 = vsub.f32 %v3338_v5, %v1123_v10 }
 0x215   :  { %v978_v40 = vmul.f32 %v2911_v13, %v974_v61  ;;  %v1198_v56 = vsub.f32 %v976_v15, %v1060_v49  ;;  %v1036_v61 = vsel %vm1031_vm11, %v1008_v2, 0 }
 0x216   :  { %v3308_v17 = vpack.c.bf16 %v1060_v49, %v1057_v53  ;;  %v977_v54 = vmul.f32 %v2911_v13, %v973_v18  ;;  %v1191_v47 = vsub.f32 %v975_v1, %v1057_v53  ;;  %v1125_v58 = vand.u32 4294901760, %v1124_v25 }
 0x217   :  { %v1066_v0 = vand.u32 4294901760, %v978_v40  ;;  %991 = vrot.lane.b32.xlu0 %v975_v1, %s2862_s30  ;;  %v1199_v11 = vand.u32 4294901760, %v1198_v56  ;;  %v1009_v1 = vld [vmem:[%s3577_s3 + $0x10] sm:$0xff] }
 0x218   :  { %v1063_v30 = vand.u32 4294901760, %v977_v54  ;;  %983 = vrot.lane.b32.xlu1 %v977_v54, %s2861_s1  ;;  %v1192_v31 = vand.u32 4294901760, %v1191_v47  ;;  %v3313_v32 = vpack.c.bf16 %v1198_v56, %v1191_v47  ;;  %2280 = vmatprep.mubr.f32.mxu1 %v1125_v58 }
 0x219   :  { %v1200_v33 = vsub.f32 %v1198_v56, %v1199_v11  ;;  %v1212_v34 = vsub.f32 %v978_v40, %v1066_v0  ;;  %v1010_v56 = vld [vmem:[%s3577_s3 + $0x18] sm:$0xff] }
 0x21a   :  { %v3315_v35 = vpack.c.bf16 %v1066_v0, %v1063_v30  ;;  %v1193_v38 = vsub.f32 %v1191_v47, %v1192_v31  ;;  %v1205_v39 = vsub.f32 %v977_v54, %v1063_v30  ;;  %v3317_v52 = vpack.c.bf16 %v1199_v11, %v1192_v31 }
 0x21b   :  { %995 = vrot.lane.b32.xlu0 %v977_v54, %s2862_s30  ;;  %v1201_v13 = vand.u32 4294901760, %v1200_v33  ;;  %v1213_v14 = vand.u32 4294901760, %v1212_v34  ;;  %v1039_v0 = vsel %vm1031_vm11, %v1009_v1, 0  ;;  %v3383_v11 = vand.u32 4294901760, %v1036_v61  ;;  %v1003_v1 = vld [vmem:[%s3579_s5] sm:$0xff] }
 0x21c   :  { %985 = vrot.lane.b32.xlu1 %v978_v40, %s2861_s1  ;;  %v1194_v21 = vand.u32 4294901760, %v1193_v38  ;;  %v1206_v46 = vand.u32 4294901760, %v1205_v39  ;;  %v3321_v50 = vpack.c.bf16 %v1212_v34, %v1205_v39 }
 0x21d   :  { %v1214_v60 = vsub.f32 %v1212_v34, %v1213_v14  ;;  %v1042_v34 = vsel %vm1031_vm11, %v1010_v56, 0 }
 0x21e   :  { %v3323_v57 = vpack.c.bf16 %v1201_v13, %v1194_v21  ;;  %v1207_v3 = vsub.f32 %v1205_v39, %v1206_v46  ;;  %v3325_v16 = vpack.c.bf16 %v1213_v14, %v1206_v46  ;;  %v3394_v14 = vand.u32 4294901760, %v1039_v0 }
 0x21f   :  { %v1215_v24 = vand.u32 4294901760, %v1214_v60  ;;  %v3402_v60 = vsub.f32 %v1036_v61, %v3383_v11  ;;  %v2863_v61 = vmov 0  }
 0x220   :  { %993 = vrot.lane.b32.xlu1 %v976_v15, %s2862_s30  ;;  %v1208_v27 = vand.u32 4294901760, %v1207_v3  ;;  %v3404_v3 = vand.u32 4294901760, %v1042_v34  ;;  %2816 = vset.pattern.permute.xlu0 %v2863_v61 }
 0x221   :  { %2817 = vset.pattern.permute.xlu1 %v2863_v61  ;;  %1013 = vperm.xlu0 %2816, %v1003_v1  }
 0x222   :  { %v3334_v4 = vpack.c.bf16 %v1215_v24, %v1208_v27 }
 0x224   :  { %997 = vrot.lane.b32.xlu1 %v978_v40, %s2862_s30 }
 0x285   :  { %v982_v7 = vpop.permute.xlu0 %981 }
 0x286   :  { %v988_v23 = vmul.f32 %v2919_v19, %v982_v7  ;;  %v980_v9 = vpop.permute.xlu1 %979 }
 0x287   :  { %v987_v28 = vmul.f32 %v2919_v19, %v980_v9  ;;  %v3424_v9 = vsub.f32 %v1042_v34, %v3404_v3 }
 0x288   :  { %v1048_v37 = vand.u32 4294901760, %v988_v23 }
 0x289   :  { %v1045_v48 = vand.u32 4294901760, %v987_v28  ;;  %v992_v55 = vpop.permute.xlu0 %991 }
 0x28a   :  { %v3347_v51 = vsub.f32 %v988_v23, %v1048_v37  ;;  %v984_v6 = vpop.permute.xlu1 %983  ;;  %v999_v63 = vmul.f32 %v2930_v29, %v992_v55  ;;  %v1133_v23 = vand.u32 4294901760, %v3402_v60 }
 0x28b   :  { %v3349_v45 = vpack.c.bf16 %v1048_v37, %v1045_v48  ;;  %v3351_v42 = vsub.f32 %v987_v28, %v1045_v48  ;;  %v989_v43 = vmul.f32 %v2919_v19, %v984_v6 }
 0x28c   :  { %v1171_v44 = vand.u32 4294901760, %v3347_v51  ;;  %v1069_v53 = vand.u32 4294901760, %v999_v63 }
 0x28d   :  { %v1164_v62 = vand.u32 4294901760, %v3351_v42  ;;  %2605 = vmatprep.subr.bf16.mxu1 %v3349_v45  ;;  %2725 = vmatprep.subr.bf16.mxu0 %v3349_v45  ;;  %v1051_v8 = vand.u32 4294901760, %v989_v43  ;;  %v996_v20 = vpop.permute.xlu0 %995 }
 0x28e   :  { %v986_v22 = vpop.permute.xlu1 %985  ;;  %2607 = vmatpush3.bf16.msra.mxu1 %v3349_v45  ;;  %2727 = vmatpush3.bf16.msra.mxu0 %v3349_v45  ;;  %v1001_v12 = vmul.f32 %v2930_v29, %v996_v20  ;;  %v3389_v38 = vsub.f32 %v999_v63, %v1069_v53  ;;  %v1172_v7 = vsub.f32 %v3347_v51, %v1171_v44 }
 0x28f   :  { %v990_v15 = vmul.f32 %v2919_v19, %v986_v22  ;;  %v3365_v41 = vpack.c.bf16 %v1171_v44, %v1164_v62  ;;  %v3372_v18 = vsub.f32 %v989_v43, %v1051_v8  ;;  %v1165_v6 = vsub.f32 %v3351_v42, %v1164_v62 }
 0x290   :  { %v1075_v30 = vand.u32 4294901760, %v1001_v12  ;;  %v1220_v25 = vand.u32 4294901760, %v3389_v38  ;;  %v1173_v63 = vand.u32 4294901760, %v1172_v7  ;;  %v1153_v62 = vand.u32 4294901760, %v3424_v9 }
 0x291   :  { %v1054_v49 = vand.u32 4294901760, %v990_v15  ;;  %v1178_v39 = vand.u32 4294901760, %v3372_v18  ;;  %v1166_v22 = vand.u32 4294901760, %v1165_v6 }
 0x292   :  { %v994_v40 = vpop.permute.xlu1 %993  ;;  %v3408_v26 = vsub.f32 %v1001_v12, %v1075_v30  ;;  %v1004_v12 = vld [vmem:[%s3579_s5 + $0x8] sm:$0xff] }
 0x293   :  { %v3377_v19 = vpack.c.bf16 %v1054_v49, %v1051_v8  ;;  %v3379_v54 = vsub.f32 %v990_v15, %v1054_v49  ;;  %v1000_v47 = vmul.f32 %v2930_v29, %v994_v40  ;;  %v1134_v8 = vsub.f32 %v3402_v60, %v1133_v23  ;;  %1018 = vperm.xlu1 %2817, %v1004_v12  }
 0x294   :  { %v1234_v37 = vand.u32 4294901760, %v3408_v26  ;;  %v1179_v49 = vsub.f32 %v3372_v18, %v1178_v39 }
 0x295   :  { %v1185_v31 = vand.u32 4294901760, %v3379_v54  ;;  %v1072_v33 = vand.u32 4294901760, %v1000_v47  ;;  %2609 = vmatprep.subr.bf16.mxu1 %v3377_v19  ;;  %2729 = vmatprep.subr.bf16.mxu0 %v3377_v19  ;;  %v1135_v40 = vand.u32 4294901760, %v1134_v8  ;;  %v2865_v8 = vmov 2  }
 0x296   :  { %v998_v13 = vpop.permute.xlu1 %997  ;;  %2611 = vmatpush3.bf16.msra.mxu1 %v3377_v19  ;;  %2731 = vmatpush3.bf16.msra.mxu0 %v3377_v19 }
 0x297   :  { %v3396_v21 = vsub.f32 %v1000_v47, %v1072_v33  ;;  %v1002_v46 = vmul.f32 %v2930_v29, %v998_v13  ;;  %2613 = vmatprep.subr.bf16.mxu1 %v3308_v17  ;;  %2733 = vmatprep.subr.bf16.mxu0 %v3308_v17  ;;  %v3406_v24 = vpack.c.bf16 %v1185_v31, %v1178_v39  ;;  %v1005_v39 = vld [vmem:[%s3579_s5 + $0x10] sm:$0xff] }
 0x298   :  { %v3415_v29 = vsub.f32 %v1039_v0, %v3394_v14  ;;  %v3431_v48 = vpack.c.bf16 %v1072_v33, %v1069_v53  ;;  %v1186_v2 = vsub.f32 %v3379_v54, %v1185_v31  ;;  %v2628_v53 = vpack.c.bf16 %v1173_v63, %v1166_v22  ;;  %v1006_v31 = vld [vmem:[%s3579_s5 + $0x18] sm:$0xff]  ;;  %1023 = vperm.xlu1 %2817, %v1005_v39  }
 0x299   :  { %v1227_v27 = vand.u32 4294901760, %v3396_v21  ;;  %v1078_v36 = vand.u32 4294901760, %v1002_v46  ;;  %v1154_v47 = vsub.f32 %v3424_v9, %v1153_v62  ;;  %1028 = vperm.xlu0 %2816, %v1006_v31  }
 0x29a   :  { %2615 = vmatpush3.bf16.msra.mxu1 %v3308_v17  ;;  %2735 = vmatpush3.bf16.msra.mxu0 %v3308_v17  ;;  %v1143_v43 = vand.u32 4294901760, %v3415_v29  ;;  %v1187_v56 = vand.u32 4294901760, %v1186_v2 }
 0x29b   :  { %v3417_v58 = vsub.f32 %v1002_v46, %v1078_v36  ;;  %2617 = vmatprep.subr.bf16.mxu1 %v3315_v35  ;;  %2737 = vmatprep.subr.bf16.mxu0 %v3315_v35  ;;  %v3428_v28 = vpack.c.bf16 %v1227_v27, %v1220_v25  ;;  %v3448_v20 = vpack.c.bf16 %v1078_v36, %v1075_v30  ;;  %v1180_v30 = vand.u32 4294901760, %v1179_v49 }
 0x29c   :  { %v1144_v15 = vsub.f32 %v3415_v29, %v1143_v43  ;;  %v1155_v34 = vand.u32 4294901760, %v1154_v47  ;;  %v1228_v13 = vsub.f32 %v3396_v21, %v1227_v27  ;;  %v1221_v46 = vsub.f32 %v3389_v38, %v1220_v25  ;;  %v1766_v27 = vld [vmem:[%s3579_s5] sm:$0x1]  ;;  %s2866_s5 = smov [#allocation5]  }
 0x29d   :  { %v1241_v55 = vand.u32 4294901760, %v3417_v58  ;;  %v2632_v33 = vpack.c.bf16 %v1187_v56, %v1180_v30  ;;  %v2864_v36 = vmov 1   ;;  %v1235_v25 = vsub.f32 %v3408_v26, %v1234_v37  ;;  %s1809_s27 = sshll.u32 %s2866_s5, 4  ;;  %s1810_s27 = int_to_ptr.vmem [resolvable:$true] %s1809_s27 }
 0x29e   :  { %2619 = vmatpush3.bf16.msra.mxu1 %v3315_v35  ;;  %2739 = vmatpush3.bf16.msra.mxu0 %v3315_v35  ;;  %v1145_v0 = vand.u32 4294901760, %v1144_v15  ;;  %v1229_v7 = vand.u32 4294901760, %v1228_v13  ;;  %v1222_v63 = vand.u32 4294901760, %v1221_v46  ;;  %v2652_v15 = vpack.c.bf16 %v3347_v51, %v3351_v42  ;;  %s2833_s28 = scalar_lea.vmem %s1810_s27, 16  ;;  %s2837_s0 = scalar_lea.vmem %s1810_s27, 32 }
 0x29f   :  { %2621 = vmatprep.subr.bf16.mxu1 %v3431_v48  ;;  %2741 = vmatprep.subr.bf16.mxu0 %v3431_v48  ;;  %v3442_v44 = vpack.c.bf16 %v1241_v55, %v1234_v37  ;;  %v1242_v6 = vsub.f32 %v3417_v58, %v1241_v55  ;;  %v2656_v37 = vpack.c.bf16 %v3379_v54, %v3372_v18  ;;  %p2834_p5 = scmp.ne.s32.totalorder %s1810_s27, %s2833_s28  ;;  %p2838_p6 = scmp.lt.s32.totalorder %s1810_s27, %s1810_s27 }
 0x2a0   :  { %2819 = vset.pattern.permute.xlu0 %v2864_v36  ;;  %2818 = vset.pattern.permute.xlu1 %v2864_v36  ;;  %v2644_v22 = vpack.c.bf16 %v1229_v7, %v1222_v63  ;;  %v2672_v51 = vpack.c.bf16 %v3417_v58, %v3408_v26  ;;  %p2839_p7 = scmp.lt.s32.totalorder %s2837_s0, %s2833_s28 }
 0x2a1   :  { %1772 = vperm.xlu0 %2819, %v1004_v12   ;;  %1768 = vperm.xlu1 %2818, %v1003_v1   ;;  %v1243_v2 = vand.u32 4294901760, %v1242_v6 }
 0x2a2   :  { %2623 = vmatpush3.bf16.msra.mxu1 %v3431_v48  ;;  %2743 = vmatpush3.bf16.msra.mxu0 %v3431_v48  ;;  %p2840_p8 = por %p2839_p7, %p2838_p6 }
 0x2a3   :  { %2625 = vmatprep.subr.bf16.mxu1 %v3448_v20  ;;  %2745 = vmatprep.subr.bf16.mxu0 %v3448_v20 }
 0x2a4   :  { %p2841_p9 = pnand %p2840_p8, %p2834_p5 }
 0x2a5   :  { %2820 = vset.pattern.permute.xlu0 %v2865_v8  ;;  %1776 = vperm.xlu1 %2818, %v1005_v39  }
 0x2a6   :  { %2627 = vmatpush3.bf16.msra.mxu1 %v3448_v20  ;;  %2747 = vmatpush3.bf16.msra.mxu0 %v3448_v20 }
 0x2a7   :  { %2629 = vmatprep.subr.bf16.mxu1 %v2628_v53  ;;  %1798 = vperm.xlu0 %2820, %v1766_v27  }
 0x2a9   :  { %2281 = vmatmul.mubr.f32.vlgmr.msra.gmra.mrb[4].mxu1 %v1135_v40  ;;  %2431 = vmatmul.mubr.f32.vlgmr.msra.gmra.mrb[4].mxu0 %v3383_v11 }
 0x2aa   :  { %2631 = vmatpush3.bf16.msra.mxu1 %v2628_v53  ;;  %2283 = vmatprep.mubr.f32.mxu1 %v1145_v0 }
 0x2ab   :  { %2633 = vmatprep.subr.bf16.mxu1 %v2632_v33  ;;  %1780 = vperm.xlu1 %2818, %v1006_v31  }
 0x2ad   :  { %2284 = vmatmul.mubr.f32.gmra.mrb[6].mxu1 %v1155_v34 }
 0x2ae   :  { %2635 = vmatpush3.bf16.msra.mxu1 %v2632_v33  ;;  %2310 = vmatprep.mubr.f32.mxu1 %v3332_v59 }
 0x2af   :  { %2637 = vmatprep.subr.bf16.mxu1 %v3323_v57 }
 0x2b2   :  { %2639 = vmatpush3.bf16.msra.mxu1 %v3323_v57  ;;  %v1236_v57 = vand.u32 4294901760, %v1235_v25 }
 0x2b3   :  { %2641 = vmatprep.subr.bf16.mxu1 %v3334_v4 }
 0x2b4   :  { %v2648_v55 = vpack.c.bf16 %v1243_v2, %v1236_v57 }
 0x2b6   :  { %2643 = vmatpush3.bf16.msra.mxu1 %v3334_v4  ;;  %v2668_v4 = vpack.c.bf16 %v3396_v21, %v3389_v38 }
 0x2b7   :  { %2645 = vmatprep.subr.bf16.mxu1 %v2644_v22 }
 0x2ba   :  { %2647 = vmatpush3.bf16.msra.mxu1 %v2644_v22 }
 0x2bb   :  { %2649 = vmatprep.subr.bf16.mxu1 %v2648_v55 }
 0x2be   :  { %2651 = vmatpush3.bf16.msra.mxu1 %v2648_v55 }
 0x2bf   :  { %2653 = vmatprep.subr.bf16.mxu1 %v2652_v15 }
 0x2c1   :  { %2311 = vmatmul.mubr.f32.vlgmr.msra.gmra.mrb[4].mxu1 %v3383_v11 }
 0x2c2   :  { %2655 = vmatpush3.bf16.msra.mxu1 %v2652_v15  ;;  %2313 = vmatprep.mubr.f32.mxu1 %v3394_v14 }
 0x2c3   :  { %2657 = vmatprep.subr.bf16.mxu1 %v2656_v37 }
 0x2c5   :  { %2314 = vmatmul.mubr.f32.gmra.mrb[6].mxu1 %v3404_v3 }
 0x2c6   :  { %2659 = vmatpush3.bf16.msra.mxu1 %v2656_v37  ;;  %2340 = vmatprep.mubr.f32.mxu1 %v3338_v5 }
 0x2c7   :  { %2661 = vmatprep.subr.bf16.mxu1 %v3313_v32 }
 0x2ca   :  { %2663 = vmatpush3.bf16.msra.mxu1 %v3313_v32 }
 0x2cb   :  { %2665 = vmatprep.subr.bf16.mxu1 %v3321_v50 }
 0x2ce   :  { %2667 = vmatpush3.bf16.msra.mxu1 %v3321_v50  ;;  %v1014_v50 = vpop.permute.xlu0 %1013 }
 0x2cf   :  { %2669 = vmatprep.subr.bf16.mxu1 %v2668_v4 }
 0x2d2   :  { %2671 = vmatpush3.bf16.msra.mxu1 %v2668_v4 }
 0x2d3   :  { %2673 = vmatprep.subr.bf16.mxu1 %v2672_v51 }
 0x2d6   :  { %2675 = vmatpush3.bf16.msra.mxu1 %v2672_v51 }
 0x2d7   :  { %2677 = vmatprep.subr.bf16.mxu1 %v3349_v45 }
 0x2d9   :  { %2341 = vmatmul.mubr.f32.vlgmr.msra.gmra.mrb[4].mxu1 %v3402_v60 }
 0x2da   :  { %2679 = vmatpush3.bf16.msra.mxu1 %v3349_v45  ;;  %2343 = vmatprep.mubr.f32.mxu1 %v3415_v29 }
 0x2db   :  { %2681 = vmatprep.subr.bf16.mxu1 %v3377_v19 }
 0x2dd   :  { %2344 = vmatmul.mubr.f32.gmra.mrb[6].mxu1 %v3424_v9 }
 0x2de   :  { %2683 = vmatpush3.bf16.msra.mxu1 %v3377_v19  ;;  %2370 = vmatprep.mubr.f32.mxu1 %v1123_v10 }
 0x2df   :  { %2685 = vmatprep.subr.bf16.mxu1 %v3308_v17 }
 0x2e2   :  { %2687 = vmatpush3.bf16.msra.mxu1 %v3308_v17 }
 0x2e3   :  { %2689 = vmatprep.subr.bf16.mxu1 %v3315_v35 }
 0x2e6   :  { %2691 = vmatpush3.bf16.msra.mxu1 %v3315_v35 }
 0x2e7   :  { %2693 = vmatprep.subr.bf16.mxu1 %v3431_v48 }
 0x2ea   :  { %2695 = vmatpush3.bf16.msra.mxu1 %v3431_v48 }
 0x2eb   :  { %2697 = vmatprep.subr.bf16.mxu1 %v3448_v20 }
 0x2ee   :  { %2699 = vmatpush3.bf16.msra.mxu1 %v3448_v20 }
 0x2ef   :  { %2701 = vmatprep.subr.bf16.mxu1 %v3365_v41 }
 0x2f1   :  { %2371 = vmatmul.mubr.f32.vlgmr.msra.gmra.mrb[4].mxu1 %v1133_v23 }
 0x2f2   :  { %2703 = vmatpush3.bf16.msra.mxu1 %v3365_v41  ;;  %2373 = vmatprep.mubr.f32.mxu1 %v1143_v43 }
 0x2f3   :  { %2705 = vmatprep.subr.bf16.mxu1 %v3406_v24 }
 0x2f5   :  { %2374 = vmatmul.mubr.f32.gmra.mrb[6].mxu1 %v1153_v62 }
 0x2f6   :  { %2707 = vmatpush3.bf16.msra.mxu1 %v3406_v24  ;;  %2400 = vmatprep.mubr.f32.mxu1 %v3332_v59 }
 0x2f7   :  { %2709 = vmatprep.subr.bf16.mxu1 %v3317_v52 }
 0x2fa   :  { %2711 = vmatpush3.bf16.msra.mxu1 %v3317_v52 }
 0x2fb   :  { %2713 = vmatprep.subr.bf16.mxu1 %v3325_v16 }
 0x2fe   :  { %2715 = vmatpush3.bf16.msra.mxu1 %v3325_v16 }
 0x2ff   :  { %2717 = vmatprep.subr.bf16.mxu1 %v3428_v28 }
 0x302   :  { %2719 = vmatpush3.bf16.msra.mxu1 %v3428_v28 }
 0x303   :  { %2721 = vmatprep.subr.bf16.mxu1 %v3442_v44 }
 0x306   :  { %2723 = vmatpush3.bf16.msra.mxu1 %v3442_v44 }
 0x307   :  { %2748 = vmatprep.subr.bf16.mxu1 %v3349_v45 }
 0x309   :  { %2401 = vmatmul.mubr.f32.vlgmr.msra.gmra.mrb[4].mxu1 %v3383_v11 }
 0x30a   :  { %2754 = vmatpush3.bf16.msra.mxu1 %v3349_v45  ;;  %2403 = vmatprep.mubr.f32.mxu1 %v3394_v14 }
 0x30b   :  { %2749 = vmatprep.subr.bf16.mxu1 %v3377_v19 }
 0x30d   :  { %2404 = vmatmul.mubr.f32.gmra.mrb[6].mxu1 %v3404_v3 }
 0x30e   :  { %2755 = vmatpush3.bf16.msra.mxu1 %v3377_v19  ;;  %2433 = vmatprep.mubr.f32.mxu1 %v3394_v14 }
 0x30f   :  { %2750 = vmatprep.subr.bf16.mxu1 %v3308_v17 }
 0x312   :  { %2756 = vmatpush3.bf16.msra.mxu1 %v3308_v17  ;;  %v1019_v16 = vpop.permute.xlu1 %1018 }
 0x313   :  { %2751 = vmatprep.subr.bf16.mxu1 %v3315_v35 }
 0x316   :  { %2757 = vmatpush3.bf16.msra.mxu1 %v3315_v35 }
 0x317   :  { %2752 = vmatprep.subr.bf16.mxu1 %v3431_v48  ;;  %v1024_v17 = vpop.permute.xlu1 %1023 }
 0x318   :  { %v1029_v59 = vpop.permute.xlu0 %1028 }
 0x31a   :  { %2758 = vmatpush3.bf16.msra.mxu1 %v3431_v48 }
 0x31b   :  { %2753 = vmatprep.subr.bf16.mxu1 %v3448_v20 }
 0x31e   :  { %2759 = vmatpush3.bf16.msra.mxu1 %v3448_v20 }
 0x320   :  { %v1773_v18 = vpop.permute.xlu0 %1772  ;;  %v1769_v54 = vpop.permute.xlu1 %1768 }
 0x321   :  { %2434 = vmatmul.mubr.f32.vlgmr.msra.gmra.mrb[6].mxu1 %v3404_v3 }
 0x324   :  { %v1777_v3 = vpop.permute.xlu1 %1776 }
 0x326   :  { %v1799_v61 = vpop.permute.xlu0 %1798 }
 0x32a   :  { %v1781_v28 = vpop.permute.xlu1 %1780 }
 0x37c   :  { %v2432_v32 = vpop.f32.mrb[4].mxu0 }
 0x37d   :  { %v1740_v52 = vpop.f32.mrb[5].mxu0 }
 0x3dc   :  { %v2402_v5 = vpop.f32.mrb[4].mxu1 }
 0x3dd   :  { %v2768_v10 = vadd.f32 %v2402_v5, %v1019_v16  ;;  %v1639_v45 = vpop.f32.mrb[5].mxu1 }
 0x3de   :  { %v2770_v35 = vadd.f32 %v1639_v45, %v1014_v50 }
 0x3df   :  { %v2769_v42 = vadd.f32 %v2768_v10, %v2432_v32 }
 0x3e0   :  { %v2771_v41 = vadd.f32 %v2770_v35, %v1740_v52 }
 0x3e1   :  { %v1763_v19 = vmax.f32 %v2769_v42, 0.0 }
 0x3e2   :  { %v1762_v11 = vmax.f32 %v2771_v41, 0.0 }
 0x3e3   :  { %v1784_v38 = vmul.f32 %v1773_v18, %v1763_v19 }
 0x3e4   :  { %v1783_v14 = vmul.f32 %v1769_v54, %v1762_v11 }
 0x3e6   :  { %v1787_v21 = vadd.f32 %v1784_v38, %v1783_v14 }
 0x3f4   :  { %v2435_v60 = vpop.f32.mrb[6].mxu1 }
 0x3f5   :  { %v2772_v24 = vadd.f32 %v2435_v60, %v1029_v59  ;;  %v1752_v26 = vpop.f32.mrb[7].mxu1 }
 0x3f6   :  { %v2773_v29 = vadd.f32 %v1752_v26, %v1024_v17 }
 0x3f7   :  { %v1765_v58 = vmax.f32 %v2772_v24, 0.0 }
 0x3f8   :  { %v1764_v23 = vmax.f32 %v2773_v29, 0.0 }
 0x3f9   :  { %v1786_v48 = vmul.f32 %v1781_v28, %v1765_v58 }
 0x3fa   :  { %v1785_v9 = vmul.f32 %v1777_v3, %v1764_v23 }
 0x3fc   :  { %v1788_v43 = vadd.f32 %v1787_v21, %v1785_v9 }
 0x3fe   :  { %v1789_v44 = vadd.f32 %v1788_v43, %v1786_v48 }
 0x400   :  { %v1790_v62 = vrot.slane %v1789_v44, 4 }
 0x402   :  { %v1791_v20 = vadd.f32 %v1790_v62, %v1789_v44 }
 0x404   :  { %v1792_v1 = vrot.slane %v1791_v20, 2 }
 0x406   :  { %v1793_v12 = vadd.f32 %v1792_v1, %v1791_v20 }
 0x408   :  { %v1794_v49 = vrot.slane %v1793_v12, 1 }
 0x40a   :  { %v1795_v53 = vadd.f32 %v1794_v49, %v1793_v12 }
 0x40c   :  { %v1801_v40 = vadd.f32 %v1799_v61, %v1795_v53 }
 0x40e   :  { %1802 = vst [vmem:[#allocation5] sm:$0x1] %v1801_v40 }
 0x40f   :  { %2844 = shalt.err (!%p2841_p9)
}
 0x410   :  { %s2845_s8 = scalar_lea.hbm %s3580_s6, 16 }
 0x411   :  { %p2846_p10 = scmp.ne.s32.totalorder %s3580_s6, %s2845_s8  ;;  %p2849_p11 = scmp.lt.u32.totalorder %s2845_s8, %s3580_s6 }
 0x413   :  { %p2851_p12 = pnand %p2849_p11, %p2846_p10 }
 0x415   :  { %2854 = shalt.err (!%p2851_p12)
}
 0x416   :  { %1812 = dma.vmem_to_hbm [thread:$0]  %s1810_s27, 16, %s3580_s6, [#allocation3]  }
 0x417   :  { %2857 = dma.done.wait [#allocation3], 16  }
 0x418   :  { %2858 = vsyncadd [#allocation3], 4294967280 }
 0x419   :  { %1816 = vsyncpa [#allocation3], 1 }
 0x41a   :  { %1817 = vsyncpa [#allocation4], 1 }

</bundles_post_ra>
